<compile_context>
chip_gen: v6e
topology: v6e:2x2x1
jax: 0.10.0
libtpu: 0.0.40
codegen_flags: <defaults>
</compile_context>

<pallas_src>
import functools

import jax
import jax.numpy as jnp
from jax.experimental import pallas as pl
from jax.experimental.pallas import tpu as pltpu


# ---------------------------------------------------------------------------
# Kernels
# ---------------------------------------------------------------------------
def _row_sum_kernel(x_ref, o_ref, *, lane_tile, l_total, mask_lanes):
    """Accumulate f32 per-row partial sums across the lane (H*W) grid axis."""
    @pl.when(pl.program_id(1) == 0)
    def _():
        o_ref[...] = jnp.zeros_like(o_ref)

    x = x_ref[...]
    if mask_lanes:
        # Ragged H*W: zero out lanes past the true extent (boundary block
        # contents beyond the array are unspecified).  Static trace-time flag,
        # so fully-divisible shapes pay nothing.
        col = jax.lax.broadcasted_iota(jnp.int32, x.shape, 1)
        col = col + pl.program_id(1) * lane_tile
        x = jnp.where(col < l_total, x, 0)

    # Accumulate in f32 regardless of input dtype; no full-tile upcast copy.
    o_ref[...] += jnp.sum(x, axis=-1, keepdims=True, dtype=jnp.float32)


def _row_broadcast_kernel(z_ref, o_ref):
    """Broadcast one value per row to a full lane-dense (rows, lanes) tile."""
    o_ref[...] = jnp.broadcast_to(z_ref[...], o_ref.shape).astype(o_ref.dtype)


# ---------------------------------------------------------------------------
# Wrappers
# ---------------------------------------------------------------------------
def _round_up(a, b):
    return (a + b - 1) // b * b


def _pick_row_tile(rows, cap=256):
    # Full-extent block (always layout-legal) for small row counts; otherwise
    # a multiple-of-8 tile, letting Pallas clip the ragged boundary block.
    return rows if rows <= cap else cap


def _pick_lane_tile(lanes, cap=1024):
    # Lane-dense tiles (multiple of 128); ~1 MiB f32 tiles sit near the
    # measured HBM-roofline sweet spot.
    return min(_round_up(lanes, 128), cap)


def _sum_rows(x2d):
    R, L = x2d.shape
    row_tile = _pick_row_tile(R)
    lane_tile = _pick_lane_tile(L)
    grid = (pl.cdiv(R, row_tile), pl.cdiv(L, lane_tile))
    kernel = functools.partial(
        _row_sum_kernel,
        lane_tile=lane_tile,
        l_total=L,
        mask_lanes=(L % lane_tile != 0),
    )
    return pl.pallas_call(
        kernel,
        out_shape=jax.ShapeDtypeStruct((R, 1), jnp.float32),
        grid_spec=pltpu.PrefetchScalarGridSpec(
            num_scalar_prefetch=0,
            grid=grid,
            in_specs=[pl.BlockSpec((row_tile, lane_tile), lambda i, j: (i, j))],
            out_specs=pl.BlockSpec((row_tile, 1), lambda i, j: (i, 0)),
        ),
        compiler_params=pltpu.CompilerParams(
            dimension_semantics=("parallel", "arbitrary"),
            vmem_limit_bytes=32 * 1024 * 1024,
        ),
        cost_estimate=pl.CostEstimate(
            flops=R * L,
            transcendentals=0,
            bytes_accessed=R * L * x2d.dtype.itemsize + R * 4,
        ),
    )(x2d)


def _broadcast_rows(z_col, lanes, out_dtype):
    R = z_col.shape[0]
    row_tile = _pick_row_tile(R)
    lane_tile = _pick_lane_tile(lanes)
    grid = (pl.cdiv(R, row_tile), pl.cdiv(lanes, lane_tile))
    return pl.pallas_call(
        _row_broadcast_kernel,
        out_shape=jax.ShapeDtypeStruct((R, lanes), out_dtype),
        grid_spec=pltpu.PrefetchScalarGridSpec(
            num_scalar_prefetch=0,
            grid=grid,
            in_specs=[pl.BlockSpec((row_tile, 1), lambda i, j: (i, 0))],
            out_specs=pl.BlockSpec((row_tile, lane_tile), lambda i, j: (i, j)),
        ),
        compiler_params=pltpu.CompilerParams(
            dimension_semantics=("parallel", "parallel"),
            vmem_limit_bytes=32 * 1024 * 1024,
        ),
        cost_estimate=pl.CostEstimate(
            flops=0,
            transcendentals=0,
            bytes_accessed=R * lanes * jnp.dtype(out_dtype).itemsize + R * 4,
        ),
    )(z_col)


def image_pool(x, w, gamma, beta, running_mean, running_var, eps=1e-5):
    """x: (N, Cin, H, W) NCHW; w: (Cout, Cin, 1, 1); BN params: (Cout,)."""
    N, Cin, H, W = x.shape
    Cout = w.shape[0]
    L = H * W

    # ---- pass 1: streamed global-sum reduction over H*W.  The NCHW->2D
    #      reshape is contiguous (free); ragged shapes are handled in-kernel,
    #      so x is read from HBM exactly once (no pad copies).
    x2d = x.reshape(N * Cin, L)
    sums = _sum_rows(x2d)                                 # (N*Cin, 1) f32

    # ---- tiny channel mix in plain JAX: mean, 1x1 conv, folded BN, ReLU.
    pooled = sums[:, 0].reshape(N, Cin) * (1.0 / L)       # (N, Cin) f32
    inv_std = jax.lax.rsqrt(running_var.astype(jnp.float32) + eps)
    scale = gamma.astype(jnp.float32) * inv_std                        # (Cout,)
    bias = beta.astype(jnp.float32) - running_mean.astype(jnp.float32) * scale
    w_mat = w.reshape(Cout, Cin).T.astype(jnp.float32)                 # (Cin, Cout)
    z = jnp.maximum(
        jnp.dot(pooled, w_mat, preferred_element_type=jnp.float32) * scale + bias,
        0.0,
    )                                                                  # (N, Cout)

    # ---- pass 2: bilinear upsample of a 1x1 map (align_corners=False) is a
    #      pure broadcast; write the exact (N*Cout, H*W) lane-dense output.
    z_col = z.reshape(N * Cout, 1)
    out2d = _broadcast_rows(z_col, L, x.dtype)            # (N*Cout, L)
    return out2d.reshape(N, Cout, H, W)


# ---------------------------------------------------------------------------
# Self-test
# ---------------------------------------------------------------------------
if __name__ == "__main__":
    key = jax.random.PRNGKey(0)
    N, Cin, Cout, H, W = 2, 4, 4, 16, 16
    k1, k2, k3, k4, k5, k6 = jax.random.split(key, 6)

    x = jax.random.normal(k1, (N, Cin, H, W), dtype=jnp.float32)
    w = jax.random.normal(k2, (Cout, Cin, 1, 1), dtype=jnp.float32) * 0.1
    gamma = jax.random.uniform(k3, (Cout,), minval=0.5, maxval=1.5, dtype=jnp.float32)
    beta = jax.random.normal(k4, (Cout,), dtype=jnp.float32) * 0.1
    running_mean = jax.random.normal(k5, (Cout,), dtype=jnp.float32) * 0.1
    running_var = jax.random.uniform(k6, (Cout,), minval=0.5, maxval=1.5, dtype=jnp.float32)

    out = image_pool(x, w, gamma, beta, running_mean, running_var)
    jax.block_until_ready(out)

    # Reference in plain JAX (same math as the PyTorch module in eval mode).
    pooled_ref = x.mean(axis=(2, 3))                                   # (N, Cin)
    y_ref = pooled_ref @ w.reshape(Cout, Cin).T                        # (N, Cout)
    z_ref = jnp.maximum(
        (y_ref - running_mean) / jnp.sqrt(running_var + 1e-5) * gamma + beta, 0.0)
    ref = jnp.broadcast_to(z_ref[:, :, None, None], (N, Cout, H, W))

    assert out.shape == (N, Cout, H, W)
    assert jnp.allclose(out, ref, atol=1e-5, rtol=1e-5)
    print("KERNEL_OK")
</pallas_src>

<mosaic_0001>
module attributes {stable_mosaic.version = 11 : i64} {
  func.func @_row_sum_kernel(%arg0: i32, %arg1: i32, %arg2: memref<8x256xf32, #tpu.memory_space<vmem>>, %arg3: memref<8x1xf32, #tpu.memory_space<vmem>>) attributes {dimension_semantics = [#tpu.dimension_semantics<parallel>, #tpu.dimension_semantics<arbitrary>], iteration_bounds = array<i64: 1, 1>, scalar_prefetch = 0 : i64, scratch_operands = 0 : i64, tpu.core_type = #tpu.core_type<tc>, window_params = [{transform_indices = @transform_0, window_bounds = array<i64: 8, 256>}, {transform_indices = @transform_1, window_bounds = array<i64: 8, 1>}]} {
    %c0_i32 = arith.constant 0 : i32
    %0 = arith.cmpi eq, %arg1, %c0_i32 : i32
    %1 = arith.extui %0 : i1 to i32
    %c0_i32_0 = arith.constant 0 : i32
    %2 = arith.cmpi ne, %1, %c0_i32_0 : i32
    scf.if %2 {
      %cst_6 = arith.constant 0.000000e+00 : f32
      %9 = vector.broadcast %cst_6 : f32 to vector<8x1xf32>
      %c0_7 = arith.constant 0 : index
      %c0_8 = arith.constant 0 : index
      %10 = vector.load %arg3[%c0_7, %c0_8] : memref<8x1xf32, #tpu.memory_space<vmem>>, vector<8x1xf32>
      tpu.vector_store %arg3[%c0_7, %c0_8], %9 {strides = array<i32>} : memref<8x1xf32, #tpu.memory_space<vmem>>, vector<8x1xf32>,
    } else {
    }
    %c0 = arith.constant 0 : index
    %c0_1 = arith.constant 0 : index
    %3 = vector.load %arg2[%c0, %c0_1] : memref<8x256xf32, #tpu.memory_space<vmem>>, vector<8x256xf32>
    %c0_2 = arith.constant 0 : index
    %c0_3 = arith.constant 0 : index
    %4 = vector.load %arg3[%c0_2, %c0_3] : memref<8x1xf32, #tpu.memory_space<vmem>>, vector<8x1xf32>
    %cst = arith.constant dense<0.000000e+00> : vector<8xf32>
    %5 = vector.multi_reduction <add>, %3, %cst [1] : vector<8x256xf32> to vector<8xf32>
    %6 = vector.shape_cast %5 : vector<8xf32> to vector<8x1xf32>
    %7 = arith.addf %4, %6 : vector<8x1xf32>
    %c0_4 = arith.constant 0 : index
    %c0_5 = arith.constant 0 : index
    %8 = vector.load %arg3[%c0_4, %c0_5] : memref<8x1xf32, #tpu.memory_space<vmem>>, vector<8x1xf32>
    tpu.vector_store %arg3[%c0_4, %c0_5], %7 {strides = array<i32>} : memref<8x1xf32, #tpu.memory_space<vmem>>, vector<8x1xf32>,
    return
  }
  func.func @transform_0(%arg0: i32, %arg1: i32) -> (i32, i32) {
    %c0_i32 = arith.constant 0 : i32
    return %arg0, %arg1 : i32, i32
  }
  func.func @transform_1(%arg0: i32, %arg1: i32) -> (i32, i32) {
    %c0_i32 = arith.constant 0 : i32
    %c0_i32_0 = arith.constant 0 : i32
    return %arg0, %c0_i32 : i32, i32
  }
}

</mosaic_0001>

<bundles_post_ra>
// kernel: tpu_custom_call.1
= control target key start
LH: loop header
LB: loop body
LE: loop exit
PB: predicated region body
PF: predicated region fallthrough
CT: control target
= control target key end

     0   :  { %6 = vsyncpa [#allocation3], 0  ;;  %s64_s6 = smov [#allocation2]   ;;  %s88_s0 = inlined_call_operand.hbm [shape: f32[8,256], index: 0, kind: input, shape index: {}]   ;;  %s89_s1 = inlined_call_operand.vmem [shape: f32[8,1], index: 1, kind: output, shape index: {}]  }
   0x1   :  { %s13_s7 = sshll.u32 %s64_s6, 4  ;;  %s14_s7 = int_to_ptr.vmem [resolvable:$true] %s13_s7 }
   0x2   :  { %s50_s8 = scalar_lea.vmem %s14_s7, 256  ;;  %p55_p1 = scmp.lt.s32.totalorder %s14_s7, %s14_s7 }
   0x3   :  { %p51_p0 = scmp.ne.s32.totalorder %s14_s7, %s50_s8  ;;  %p56_p2 = scmp.lt.s32.totalorder %s50_s8, %s50_s8 }
   0x5   :  { %p57_p3 = por %p56_p2, %p55_p1 }
   0x7   :  { %p58_p4 = pnand %p57_p3, %p51_p0 }
   0x9   :  { %61 = shalt.err (!%p58_p4)
}
   0xa   :  { %16 = dma.hbm_to_vmem [thread:$0]  %s88_s0, 256, %s14_s7, [#allocation3]  }
   0xb   :  { %62 = dma.done.wait [#allocation3], 256  }
   0xc   :  { %63 = vsyncadd [#allocation3], 4294967040  ;;  %vm24_vm0 = vcmask 7168   ;;  %v65_v0 = vmov 0.0   ;;  %v26_v1 = vld [vmem:[#allocation2] sm:$0xff]  ;;  %v27_v2 = vld [vmem:[#allocation2 + $0x8] sm:$0xff] }
   0xd   :  { %25 = vst.msk [vmem:[%s89_s1] sm:$0xff] %vm24_vm0, %v65_v0  ;;  %v29_v3 = vadd.f32 %v27_v2, %v26_v1 }
   0xf   :  { %30 = vadd.xlane.f32.xlu0 %v29_v3 }
  0x14   :  { %v28_v4 = vld [vmem:[%s89_s1] sm:$0xff] }
  0x98   :  { %v31_v5 = vpop.xlane.xlu0 %30 }
  0x99   :  { %v32_v6 = vadd.f32 %v31_v5, %v28_v4 }
  0x9b   :  { %34 = vst.msk [vmem:[%s89_s1] sm:$0xff] %vm24_vm0, %v32_v6 }
  0x9c   :  { %39 = vsyncpa [#allocation3], 1 }

</bundles_post_ra>
